<compile_context>
chip_gen: v7x
topology: tpu7x:2x2x1
jax: 0.10.0
libtpu: 0.0.40
codegen_flags: <defaults>
</compile_context>

<pallas_src>
import functools
import math

import numpy as np
import jax
import jax.numpy as jnp
from jax import lax
from jax.experimental import pallas as pl
from jax.experimental.pallas import tpu as pltpu


# --------------------------------------------------------------------------
# Cell-anchor generation (pure numpy glue, mirrors the reference code exactly)
# --------------------------------------------------------------------------
def _mkanchors(ws, hs, x_ctr, y_ctr):
    ws = ws[:, np.newaxis]
    hs = hs[:, np.newaxis]
    return np.hstack((x_ctr - 0.5 * (ws - 1), y_ctr - 0.5 * (hs - 1),
                      x_ctr + 0.5 * (ws - 1), y_ctr + 0.5 * (hs - 1)))


def _whctrs(anchor):
    w = anchor[2] - anchor[0] + 1
    h = anchor[3] - anchor[1] + 1
    return w, h, anchor[0] + 0.5 * (w - 1), anchor[1] + 0.5 * (h - 1)


def _ratio_enum(anchor, ratios):
    w, h, x_ctr, y_ctr = _whctrs(anchor)
    size = w * h
    size_ratios = size / ratios
    ws = np.round(np.sqrt(size_ratios))
    hs = np.round(ws * ratios)
    return _mkanchors(ws, hs, x_ctr, y_ctr)


def _scale_enum(anchor, scales):
    w, h, x_ctr, y_ctr = _whctrs(anchor)
    return _mkanchors(w * scales, h * scales, x_ctr, y_ctr)


def _generate_anchors(base_size, scales, aspect_ratios):
    anchor = np.array([1, 1, base_size, base_size], dtype=np.float64) - 0.5
    anchors = _ratio_enum(anchor, aspect_ratios)
    anchors = np.vstack([_scale_enum(anchors[i, :], scales)
                         for i in range(anchors.shape[0])])
    return anchors


def generate_anchors(stride, sizes, aspect_ratios):
    return _generate_anchors(stride,
                             np.array(sizes, dtype=np.float64) / stride,
                             np.array(aspect_ratios, dtype=np.float64))


def make_cell_anchors_atss(anchor_sizes, anchor_strides):
    # aspect_ratios = [1.0], scales_per_octave = 1  ->  one anchor per location
    cell_anchors = []
    for stride, size in zip(anchor_strides, anchor_sizes):
        cell_anchors.append(
            generate_anchors(stride, (float(size),), (1.0,)).astype(np.float32))
    return cell_anchors  # each is (1, 4)


# --------------------------------------------------------------------------
# Fused Pallas kernel: anchors + visibility + BoxCoder.decode('BOX'),
# all FPN levels in one pallas_call, lane-dense flattened layout.
# --------------------------------------------------------------------------
_DW_CLAMP = math.log(1000.0 / 16)
_LANE = 128
_MIN_TILE = 8 * _LANE     # keeps the (8, 128) f32/i32 block rule
_MAX_TILE = 32 * _LANE    # 4096 elems: few grid steps, bounded per-level pad waste


def _round_up(x, m):
    return (x + m - 1) // m * m


def _atss_fused_kernel(meta_ref, reg_ref, dec_ref, anc_ref, vis_ref, *,
                       im_w, im_h, straddle, clamp,
                       inv_wx, inv_wy, inv_ww, inv_wh):
    # Block shapes:
    #   meta_ref : (n_tiles, 8) int32 SMEM
    #              [elem_off, W, stride, 2*bx1, 2*by1, 2*bx2, 2*by2, pad]
    #   reg_ref  : (1, 4, TS, 128)  head box-regression, one image, one tile
    #   dec_ref  : (1, 4, TS, 128)  decoded boxes (coordinate-major)
    #   anc_ref  : (4, TS, 128)     anchors (batch-shared, VMEM-resident over b)
    #   vis_ref  : (TS, 128) int32  visibility flags (batch-shared)
    t = pl.program_id(0)
    b = pl.program_id(1)
    TS = vis_ref.shape[0]

    elem_off = meta_ref[t, 0]          # flat element offset within the level
    w_l = meta_ref[t, 1]               # level feature-map width
    stride2 = meta_ref[t, 2] * 2       # 2 * stride
    m_x1 = meta_ref[t, 3]              # 2 * base-anchor coords (exact ints)
    m_y1 = meta_ref[t, 4]
    m_x2 = meta_ref[t, 5]
    m_y2 = meta_ref[t, 6]

    # Flat within-level index of every element of this tile.
    sub = lax.broadcasted_iota(jnp.int32, (TS, _LANE), 0)
    lane = lax.broadcasted_iota(jnp.int32, (TS, _LANE), 1)
    idx = sub * _LANE + lane + elem_off

    # row = idx // W, col = idx % W via an f32 quotient + exact int +/-1 fixup
    # (valid while H*W < 2**20 per level, asserted host-side).
    w_f = jnp.full((TS, _LANE), w_l, dtype=jnp.int32).astype(jnp.float32)
    q = idx.astype(jnp.float32) / w_f
    row0 = q.astype(jnp.int32)
    col0 = idx - row0 * w_l
    row = row0 + (col0 >= w_l).astype(jnp.int32) - (col0 < 0).astype(jnp.int32)
    col = idx - row * w_l

    # Anchors: all-integer math then one exact vector int->float convert.
    sx2 = col * stride2
    sy2 = row * stride2
    ax1 = (sx2 + m_x1).astype(jnp.float32) * 0.5
    ay1 = (sy2 + m_y1).astype(jnp.float32) * 0.5
    ax2 = (sx2 + m_x2).astype(jnp.float32) * 0.5
    ay2 = (sy2 + m_y2).astype(jnp.float32) * 0.5

    # Anchor + visibility stores only for the first image of the batch: the
    # blocks are batch-resident (index_map ignores b) and written back once.
    @pl.when(b == 0)
    def _():
        anc_ref[0, :, :] = ax1
        anc_ref[1, :, :] = ay1
        anc_ref[2, :, :] = ax2
        anc_ref[3, :, :] = ay2
        if straddle >= 0:
            inside = ((ax1 >= -straddle) & (ay1 >= -straddle) &
                      (ax2 < im_w + straddle) & (ay2 < im_h + straddle))
            vis_ref[...] = inside.astype(jnp.int32)
        else:
            vis_ref[...] = jnp.ones((TS, _LANE), jnp.int32)

    # BoxCoder.decode('BOX')
    widths = ax2 - ax1 + 1.0
    heights = ay2 - ay1 + 1.0
    ctr_x = (ax1 + ax2) * 0.5
    ctr_y = (ay1 + ay2) * 0.5

    dx = reg_ref[0, 0, :, :] * inv_wx
    dy = reg_ref[0, 1, :, :] * inv_wy
    dw = jnp.minimum(reg_ref[0, 2, :, :] * inv_ww, clamp)
    dh = jnp.minimum(reg_ref[0, 3, :, :] * inv_wh, clamp)

    pred_ctr_x = dx * widths + ctr_x
    pred_ctr_y = dy * heights + ctr_y
    half_w = 0.5 * (jnp.exp(dw) * widths - 1.0)
    half_h = 0.5 * (jnp.exp(dh) * heights - 1.0)

    dec_ref[0, 0, :, :] = pred_ctr_x - half_w
    dec_ref[0, 1, :, :] = pred_ctr_y - half_h
    dec_ref[0, 2, :, :] = pred_ctr_x + half_w
    dec_ref[0, 3, :, :] = pred_ctr_y + half_h


def _pick_tile_elems(level_ns):
    """Tile size in elements: multiple of 8*128, big enough to amortize the
    per-step overhead, capped so small levels don't over-pad.  With >=2 FPN
    levels there are always >=2 tiles, so the 'parallel' tile axis shards
    across both v7x TensorCores."""
    tn = min(_MAX_TILE, _round_up(max(level_ns), _MIN_TILE))
    if len(level_ns) == 1 and level_ns[0] > _MIN_TILE:
        tn = min(tn, _round_up(_round_up(level_ns[0], _MIN_TILE) // 2, _MIN_TILE))
    return tn


def atss_levels_fused(box_regression_levels, anchor_strides, cell_anchors,
                      im_h, im_w, straddle_thresh=0.0, tile_elems=None):
    """One fused pallas_call over all FPN levels.

    box_regression_levels: list of (B, 4, Hl, Wl) float32 (coordinate-major,
    as produced by the head).  Returns per-level, coordinate-major:
      anchors (4, Nl), visibility (Nl,) int32, decoded (B, 4, Nl)."""
    regs = [jnp.asarray(r, jnp.float32) for r in box_regression_levels]
    B = regs[0].shape[0]
    level_hw = [(int(r.shape[2]), int(r.shape[3])) for r in regs]
    level_ns = [h * w for h, w in level_hw]
    for n in level_ns:
        assert n < (1 << 20), "per-level H*W must stay < 2**20 for the div fixup"

    tn = int(tile_elems) if tile_elems else _pick_tile_elems(level_ns)
    assert tn % _MIN_TILE == 0
    ts = tn // _LANE

    # Flatten + pad each level to a multiple of the tile size, concatenate.
    # (Single fused XLA pass; in a full pipeline the head would emit this
    # layout directly.)
    pieces, meta_rows, level_slices = [], [], []
    chunk_off = 0
    for reg, stride, base, (h, w), n in zip(regs, anchor_strides, cell_anchors,
                                            level_hw, level_ns):
        base = np.asarray(base, np.float64).reshape(-1, 4)
        assert base.shape[0] == 1, "ATSS uses a single cell anchor per location"
        n_pad = _round_up(n, tn)
        flat = jnp.pad(reg.reshape(B, 4, n), ((0, 0), (0, 0), (0, n_pad - n)))
        pieces.append(flat)
        b2 = [int(round(2.0 * float(v))) for v in base.reshape(4)]  # exact: x.0/x.5
        for k in range(n_pad // tn):
            meta_rows.append([k * tn, w, int(stride)] + b2 + [0])
        level_slices.append((chunk_off, n_pad // _LANE, n))
        chunk_off += n_pad // _LANE

    n_chunks = chunk_off
    reg_cat = jnp.concatenate(pieces, axis=-1).reshape(B, 4, n_chunks, _LANE)
    meta = jnp.asarray(np.asarray(meta_rows, np.int32))
    n_tiles = int(meta.shape[0])

    kernel = functools.partial(
        _atss_fused_kernel,
        im_w=float(im_w), im_h=float(im_h), straddle=float(straddle_thresh),
        clamp=_DW_CLAMP, inv_wx=1.0 / 10.0, inv_wy=1.0 / 10.0,
        inv_ww=1.0 / 5.0, inv_wh=1.0 / 5.0)

    dec, anc, vis = pl.pallas_call(
        kernel,
        grid_spec=pltpu.PrefetchScalarGridSpec(
            num_scalar_prefetch=1,
            grid=(n_tiles, B),   # tile axis outer (parallel), batch inner
            in_specs=[
                pl.BlockSpec((1, 4, ts, _LANE), lambda t, b, meta: (b, 0, t, 0)),
            ],
            out_specs=(
                pl.BlockSpec((1, 4, ts, _LANE), lambda t, b, meta: (b, 0, t, 0)),
                pl.BlockSpec((4, ts, _LANE), lambda t, b, meta: (0, t, 0)),
                pl.BlockSpec((ts, _LANE), lambda t, b, meta: (t, 0)),
            )),
        out_shape=(jax.ShapeDtypeStruct((B, 4, n_chunks, _LANE), jnp.float32),
                   jax.ShapeDtypeStruct((4, n_chunks, _LANE), jnp.float32),
                   jax.ShapeDtypeStruct((n_chunks, _LANE), jnp.int32)),
        compiler_params=pltpu.CompilerParams(
            dimension_semantics=("parallel", "arbitrary"),
            vmem_limit_bytes=32 * 1024 * 1024),
    )(meta, reg_cat)

    # Per-level views, kept coordinate-major (no (N,4) transpose here).
    anchors_lvls, vis_lvls, dec_lvls = [], [], []
    for (c0, nchunk, n) in level_slices:
        c1 = c0 + nchunk
        anchors_lvls.append(anc[:, c0:c1, :].reshape(4, -1)[:, :n])
        vis_lvls.append(vis[c0:c1, :].reshape(-1)[:n])
        dec_lvls.append(dec[:, :, c0:c1, :].reshape(B, 4, -1)[:, :, :n])
    return anchors_lvls, vis_lvls, dec_lvls


# --------------------------------------------------------------------------
# ATSS inference-path wrapper (what is implementable from the given module)
# --------------------------------------------------------------------------
def atss_forward_test(images, image_sizes, box_regression_levels,
                      anchor_sizes, anchor_strides, straddle_thresh=0.0):
    """images: (B, C, H, W) NCHW (only its spatial size feeds the anchor grid);
    box_regression_levels: list of (B, 4, Hl, Wl) per-level regressions.
    Returns per level, coordinate-major: anchors (4, Nl), visibility (Nl,),
    decoded boxes (B, 4, Nl)."""
    # TODO(synk): backbone / FPN / ATSSHead are not defined in the reference
    # module, so the per-level box_regression maps are taken as inputs here.
    cell_anchors = make_cell_anchors_atss(anchor_sizes, anchor_strides)
    im_h, im_w = image_sizes[0]
    # TODO(synk): mixed-size batches would need per-image visibility; the demo
    # (and the reference image_list here) uses a single shared image size.
    # TODO(synk): ATSSPostProcessor (score threshold + NMS) is not defined in
    # the reference module; its consumer should take these coordinate-major
    # outputs (or transpose only surviving boxes) to avoid an extra HBM pass.
    return atss_levels_fused(box_regression_levels, anchor_strides,
                             cell_anchors, im_h, im_w, straddle_thresh)


# --------------------------------------------------------------------------
# Pure numpy references for correctness checking
# --------------------------------------------------------------------------
def ref_grid_anchors(base, H, W, stride):
    sx = np.arange(0, W * stride, stride, dtype=np.float32)
    sy = np.arange(0, H * stride, stride, dtype=np.float32)
    shift_y, shift_x = np.meshgrid(sy, sx, indexing="ij")
    sxf = shift_x.reshape(-1)
    syf = shift_y.reshape(-1)
    shifts = np.stack([sxf, syf, sxf, syf], axis=1)
    return (shifts.reshape(-1, 1, 4) + base.reshape(1, -1, 4)).reshape(-1, 4)


def ref_decode(preds, anchors):
    preds = np.asarray(preds, np.float64)
    anchors = np.asarray(anchors, np.float64)
    widths = anchors[:, 2] - anchors[:, 0] + 1
    heights = anchors[:, 3] - anchors[:, 1] + 1
    ctr_x = (anchors[:, 2] + anchors[:, 0]) / 2
    ctr_y = (anchors[:, 3] + anchors[:, 1]) / 2
    dx = preds[:, 0] / 10.0
    dy = preds[:, 1] / 10.0
    dw = np.minimum(preds[:, 2] / 5.0, _DW_CLAMP)
    dh = np.minimum(preds[:, 3] / 5.0, _DW_CLAMP)
    pcx = dx * widths + ctr_x
    pcy = dy * heights + ctr_y
    pw = np.exp(dw) * widths
    ph = np.exp(dh) * heights
    return np.stack([pcx - 0.5 * (pw - 1), pcy - 0.5 * (ph - 1),
                     pcx + 0.5 * (pw - 1), pcy + 0.5 * (ph - 1)], axis=1)


# --------------------------------------------------------------------------
if __name__ == "__main__":
    key = jax.random.PRNGKey(0)
    B, C, Him, Wim = 2, 4, 32, 32
    anchor_sizes = (16, 32)
    anchor_strides = (4, 8)

    k_img, k_r0, k_r1 = jax.random.split(key, 3)
    images = jax.random.normal(k_img, (B, C, Him, Wim), dtype=jnp.float32)
    image_sizes = [(Him, Wim)] * B

    # Synthetic per-level box regressions (stand-in for the undefined head).
    regs = [
        jax.random.normal(
            k_r0, (B, 4, Him // anchor_strides[0], Wim // anchor_strides[0]),
            dtype=jnp.float32),
        jax.random.normal(
            k_r1, (B, 4, Him // anchor_strides[1], Wim // anchor_strides[1]),
            dtype=jnp.float32),
    ]

    anchors_lvls, vis_lvls, decoded_lvls = atss_forward_test(
        images, image_sizes, regs, anchor_sizes, anchor_strides)
    jax.block_until_ready((anchors_lvls, vis_lvls, decoded_lvls))

    # Correctness check against numpy references (reference uses (N, 4)
    # layout; the kernel outputs are coordinate-major, so transpose the small
    # host copies only for comparison).
    cell_anchors = make_cell_anchors_atss(anchor_sizes, anchor_strides)
    for lvl, (stride, base, reg) in enumerate(
            zip(anchor_strides, cell_anchors, regs)):
        Hl, Wl = reg.shape[-2:]
        ref_a = ref_grid_anchors(base, Hl, Wl, stride)
        got_a = np.asarray(anchors_lvls[lvl]).T
        np.testing.assert_allclose(got_a, ref_a, rtol=1e-5, atol=1e-4)

        ref_vis = ((ref_a[:, 0] >= 0) & (ref_a[:, 1] >= 0) &
                   (ref_a[:, 2] < Wim) & (ref_a[:, 3] < Him)).astype(np.int32)
        np.testing.assert_array_equal(np.asarray(vis_lvls[lvl]), ref_vis)

        reg_flat = np.transpose(np.asarray(reg), (0, 2, 3, 1)).reshape(B, -1, 4)
        got_d = np.transpose(np.asarray(decoded_lvls[lvl]), (0, 2, 1))
        for b in range(B):
            np.testing.assert_allclose(got_d[b],
                                       ref_decode(reg_flat[b], ref_a),
                                       rtol=1e-4, atol=1e-3)

    print("KERNEL_OK")
</pallas_src>

<mosaic_0001>
module attributes {stable_mosaic.version = 11 : i64} {
  func.func @_atss_fused_kernel(%arg0: i32, %arg1: i32, %arg2: memref<2x8xi32, #tpu.memory_space<smem>>, %arg3: memref<1x4x8x128xf32, #tpu.memory_space<vmem>>, %arg4: memref<1x4x8x128xf32, #tpu.memory_space<vmem>>, %arg5: memref<4x8x128xf32, #tpu.memory_space<vmem>>, %arg6: memref<8x128xi32, #tpu.memory_space<vmem>>) attributes {dimension_semantics = [#tpu.dimension_semantics<parallel>, #tpu.dimension_semantics<arbitrary>], iteration_bounds = array<i64: 2, 2>, scalar_prefetch = 1 : i64, scratch_operands = 0 : i64, tpu.core_type = #tpu.core_type<tc>, window_params = [{transform_indices = @transform_0, window_bounds = array<i64: 1, 4, 8, 128>}, {transform_indices = @transform_1, window_bounds = array<i64: 1, 4, 8, 128>}, {transform_indices = @transform_2, window_bounds = array<i64: 4, 8, 128>}, {transform_indices = @transform_3, window_bounds = array<i64: 8, 128>}]} {
    %0 = arith.index_cast %arg0 : i32 to index
    %c0 = arith.constant 0 : index
    %1 = memref.load %arg2[%0, %c0] : memref<2x8xi32, #tpu.memory_space<smem>>
    %2 = arith.index_cast %arg0 : i32 to index
    %c1 = arith.constant 1 : index
    %3 = memref.load %arg2[%2, %c1] : memref<2x8xi32, #tpu.memory_space<smem>>
    %4 = arith.index_cast %arg0 : i32 to index
    %c2 = arith.constant 2 : index
    %5 = memref.load %arg2[%4, %c2] : memref<2x8xi32, #tpu.memory_space<smem>>
    %c2_i32 = arith.constant 2 : i32
    %6 = arith.muli %5, %c2_i32 : i32
    %7 = arith.index_cast %arg0 : i32 to index
    %c3 = arith.constant 3 : index
    %8 = memref.load %arg2[%7, %c3] : memref<2x8xi32, #tpu.memory_space<smem>>
    %9 = arith.index_cast %arg0 : i32 to index
    %c4 = arith.constant 4 : index
    %10 = memref.load %arg2[%9, %c4] : memref<2x8xi32, #tpu.memory_space<smem>>
    %11 = arith.index_cast %arg0 : i32 to index
    %c5 = arith.constant 5 : index
    %12 = memref.load %arg2[%11, %c5] : memref<2x8xi32, #tpu.memory_space<smem>>
    %13 = arith.index_cast %arg0 : i32 to index
    %c6 = arith.constant 6 : index
    %14 = memref.load %arg2[%13, %c6] : memref<2x8xi32, #tpu.memory_space<smem>>
    %15 = tpu.iota {dimensions = array<i32: 0>} : vector<8x128xi32>
    %16 = tpu.iota {dimensions = array<i32: 1>} : vector<8x128xi32>
    %c128_i32 = arith.constant 128 : i32
    %17 = vector.broadcast %c128_i32 : i32 to vector<8x128xi32>
    %18 = arith.muli %15, %17 : vector<8x128xi32>
    %19 = arith.addi %18, %16 : vector<8x128xi32>
    %20 = vector.broadcast %1 : i32 to vector<8x128xi32>
    %21 = arith.addi %19, %20 : vector<8x128xi32>
    %22 = vector.broadcast %3 : i32 to vector<8x128xi32>
    %23 = arith.sitofp %22 : vector<8x128xi32> to vector<8x128xf32>
    %24 = arith.sitofp %21 : vector<8x128xi32> to vector<8x128xf32>
    %25 = arith.divf %24, %23 : vector<8x128xf32>
    %26 = arith.fptosi %25 : vector<8x128xf32> to vector<8x128xi32>
    %27 = vector.broadcast %3 : i32 to vector<8x128xi32>
    %28 = arith.muli %26, %27 : vector<8x128xi32>
    %29 = arith.subi %21, %28 : vector<8x128xi32>
    %30 = vector.broadcast %3 : i32 to vector<8x128xi32>
    %31 = arith.cmpi sge, %29, %30 : vector<8x128xi32>
    %32 = arith.extui %31 : vector<8x128xi1> to vector<8x128xi32>
    %33 = arith.addi %26, %32 : vector<8x128xi32>
    %c0_i32 = arith.constant 0 : i32
    %34 = vector.broadcast %c0_i32 : i32 to vector<8x128xi32>
    %35 = arith.cmpi slt, %29, %34 : vector<8x128xi32>
    %36 = arith.extui %35 : vector<8x128xi1> to vector<8x128xi32>
    %37 = arith.subi %33, %36 : vector<8x128xi32>
    %38 = vector.broadcast %3 : i32 to vector<8x128xi32>
    %39 = arith.muli %37, %38 : vector<8x128xi32>
    %40 = arith.subi %21, %39 : vector<8x128xi32>
    %41 = vector.broadcast %6 : i32 to vector<8x128xi32>
    %42 = arith.muli %40, %41 : vector<8x128xi32>
    %43 = vector.broadcast %6 : i32 to vector<8x128xi32>
    %44 = arith.muli %37, %43 : vector<8x128xi32>
    %45 = vector.broadcast %8 : i32 to vector<8x128xi32>
    %46 = arith.addi %42, %45 : vector<8x128xi32>
    %47 = arith.sitofp %46 : vector<8x128xi32> to vector<8x128xf32>
    %cst = arith.constant 5.000000e-01 : f32
    %48 = vector.broadcast %cst : f32 to vector<8x128xf32>
    %49 = arith.mulf %47, %48 : vector<8x128xf32>
    %50 = vector.broadcast %10 : i32 to vector<8x128xi32>
    %51 = arith.addi %44, %50 : vector<8x128xi32>
    %52 = arith.sitofp %51 : vector<8x128xi32> to vector<8x128xf32>
    %cst_0 = arith.constant 5.000000e-01 : f32
    %53 = vector.broadcast %cst_0 : f32 to vector<8x128xf32>
    %54 = arith.mulf %52, %53 : vector<8x128xf32>
    %55 = vector.broadcast %12 : i32 to vector<8x128xi32>
    %56 = arith.addi %42, %55 : vector<8x128xi32>
    %57 = arith.sitofp %56 : vector<8x128xi32> to vector<8x128xf32>
    %cst_1 = arith.constant 5.000000e-01 : f32
    %58 = vector.broadcast %cst_1 : f32 to vector<8x128xf32>
    %59 = arith.mulf %57, %58 : vector<8x128xf32>
    %60 = vector.broadcast %14 : i32 to vector<8x128xi32>
    %61 = arith.addi %44, %60 : vector<8x128xi32>
    %62 = arith.sitofp %61 : vector<8x128xi32> to vector<8x128xf32>
    %cst_2 = arith.constant 5.000000e-01 : f32
    %63 = vector.broadcast %cst_2 : f32 to vector<8x128xf32>
    %64 = arith.mulf %62, %63 : vector<8x128xf32>
    %c0_i32_3 = arith.constant 0 : i32
    %65 = arith.cmpi eq, %arg1, %c0_i32_3 : i32
    %66 = arith.extui %65 : i1 to i32
    %c0_i32_4 = arith.constant 0 : i32
    %67 = arith.cmpi ne, %66, %c0_i32_4 : i32
    scf.if %67 {
      %c0_51 = arith.constant 0 : index
      %c0_52 = arith.constant 0 : index
      %c0_53 = arith.constant 0 : index
      %132 = vector.load %arg5[%c0_51, %c0_52, %c0_53] : memref<4x8x128xf32, #tpu.memory_space<vmem>>, vector<1x8x128xf32>
      %133 = vector.shape_cast %132 : vector<1x8x128xf32> to vector<8x128xf32>
      %134 = vector.shape_cast %49 : vector<8x128xf32> to vector<1x8x128xf32>
      tpu.vector_store %arg5[%c0_51, %c0_52, %c0_53], %134 {strides = array<i32>} : memref<4x8x128xf32, #tpu.memory_space<vmem>>, vector<1x8x128xf32>,
      %c1_54 = arith.constant 1 : index
      %c0_55 = arith.constant 0 : index
      %c0_56 = arith.constant 0 : index
      %135 = vector.load %arg5[%c1_54, %c0_55, %c0_56] : memref<4x8x128xf32, #tpu.memory_space<vmem>>, vector<1x8x128xf32>
      %136 = vector.shape_cast %135 : vector<1x8x128xf32> to vector<8x128xf32>
      %137 = vector.shape_cast %54 : vector<8x128xf32> to vector<1x8x128xf32>
      tpu.vector_store %arg5[%c1_54, %c0_55, %c0_56], %137 {strides = array<i32>} : memref<4x8x128xf32, #tpu.memory_space<vmem>>, vector<1x8x128xf32>,
      %c2_57 = arith.constant 2 : index
      %c0_58 = arith.constant 0 : index
      %c0_59 = arith.constant 0 : index
      %138 = vector.load %arg5[%c2_57, %c0_58, %c0_59] : memref<4x8x128xf32, #tpu.memory_space<vmem>>, vector<1x8x128xf32>
      %139 = vector.shape_cast %138 : vector<1x8x128xf32> to vector<8x128xf32>
      %140 = vector.shape_cast %59 : vector<8x128xf32> to vector<1x8x128xf32>
      tpu.vector_store %arg5[%c2_57, %c0_58, %c0_59], %140 {strides = array<i32>} : memref<4x8x128xf32, #tpu.memory_space<vmem>>, vector<1x8x128xf32>,
      %c3_60 = arith.constant 3 : index
      %c0_61 = arith.constant 0 : index
      %c0_62 = arith.constant 0 : index
      %141 = vector.load %arg5[%c3_60, %c0_61, %c0_62] : memref<4x8x128xf32, #tpu.memory_space<vmem>>, vector<1x8x128xf32>
      %142 = vector.shape_cast %141 : vector<1x8x128xf32> to vector<8x128xf32>
      %143 = vector.shape_cast %64 : vector<8x128xf32> to vector<1x8x128xf32>
      tpu.vector_store %arg5[%c3_60, %c0_61, %c0_62], %143 {strides = array<i32>} : memref<4x8x128xf32, #tpu.memory_space<vmem>>, vector<1x8x128xf32>,
      %cst_63 = arith.constant -0.000000e+00 : f32
      %144 = vector.broadcast %cst_63 : f32 to vector<8x128xf32>
      %145 = arith.cmpf oge, %49, %144 : vector<8x128xf32>
      %cst_64 = arith.constant -0.000000e+00 : f32
      %146 = vector.broadcast %cst_64 : f32 to vector<8x128xf32>
      %147 = arith.cmpf oge, %54, %146 : vector<8x128xf32>
      %148 = arith.andi %145, %147 : vector<8x128xi1>
      %cst_65 = arith.constant 3.200000e+01 : f32
      %149 = vector.broadcast %cst_65 : f32 to vector<8x128xf32>
      %150 = arith.cmpf olt, %59, %149 : vector<8x128xf32>
      %151 = arith.andi %148, %150 : vector<8x128xi1>
      %cst_66 = arith.constant 3.200000e+01 : f32
      %152 = vector.broadcast %cst_66 : f32 to vector<8x128xf32>
      %153 = arith.cmpf olt, %64, %152 : vector<8x128xf32>
      %154 = arith.andi %151, %153 : vector<8x128xi1>
      %155 = arith.extui %154 : vector<8x128xi1> to vector<8x128xi32>
      %c0_67 = arith.constant 0 : index
      %c0_68 = arith.constant 0 : index
      %156 = vector.load %arg6[%c0_67, %c0_68] : memref<8x128xi32, #tpu.memory_space<vmem>>, vector<8x128xi32>
      tpu.vector_store %arg6[%c0_67, %c0_68], %155 {strides = array<i32>} : memref<8x128xi32, #tpu.memory_space<vmem>>, vector<8x128xi32>,
    } else {
    }
    %68 = arith.subf %59, %49 : vector<8x128xf32>
    %cst_5 = arith.constant 1.000000e+00 : f32
    %69 = vector.broadcast %cst_5 : f32 to vector<8x128xf32>
    %70 = arith.addf %68, %69 : vector<8x128xf32>
    %71 = arith.subf %64, %54 : vector<8x128xf32>
    %cst_6 = arith.constant 1.000000e+00 : f32
    %72 = vector.broadcast %cst_6 : f32 to vector<8x128xf32>
    %73 = arith.addf %71, %72 : vector<8x128xf32>
    %74 = arith.addf %49, %59 : vector<8x128xf32>
    %cst_7 = arith.constant 5.000000e-01 : f32
    %75 = vector.broadcast %cst_7 : f32 to vector<8x128xf32>
    %76 = arith.mulf %74, %75 : vector<8x128xf32>
    %77 = arith.addf %54, %64 : vector<8x128xf32>
    %cst_8 = arith.constant 5.000000e-01 : f32
    %78 = vector.broadcast %cst_8 : f32 to vector<8x128xf32>
    %79 = arith.mulf %77, %78 : vector<8x128xf32>
    %c0_9 = arith.constant 0 : index
    %c0_10 = arith.constant 0 : index
    %c0_11 = arith.constant 0 : index
    %c0_12 = arith.constant 0 : index
    %80 = vector.load %arg3[%c0_9, %c0_10, %c0_11, %c0_12] : memref<1x4x8x128xf32, #tpu.memory_space<vmem>>, vector<1x1x8x128xf32>
    %81 = vector.shape_cast %80 : vector<1x1x8x128xf32> to vector<8x128xf32>
    %cst_13 = arith.constant 1.000000e-01 : f32
    %82 = vector.broadcast %cst_13 : f32 to vector<8x128xf32>
    %83 = arith.mulf %81, %82 : vector<8x128xf32>
    %c0_14 = arith.constant 0 : index
    %c1_15 = arith.constant 1 : index
    %c0_16 = arith.constant 0 : index
    %c0_17 = arith.constant 0 : index
    %84 = vector.load %arg3[%c0_14, %c1_15, %c0_16, %c0_17] : memref<1x4x8x128xf32, #tpu.memory_space<vmem>>, vector<1x1x8x128xf32>
    %85 = vector.shape_cast %84 : vector<1x1x8x128xf32> to vector<8x128xf32>
    %cst_18 = arith.constant 1.000000e-01 : f32
    %86 = vector.broadcast %cst_18 : f32 to vector<8x128xf32>
    %87 = arith.mulf %85, %86 : vector<8x128xf32>
    %c0_19 = arith.constant 0 : index
    %c2_20 = arith.constant 2 : index
    %c0_21 = arith.constant 0 : index
    %c0_22 = arith.constant 0 : index
    %88 = vector.load %arg3[%c0_19, %c2_20, %c0_21, %c0_22] : memref<1x4x8x128xf32, #tpu.memory_space<vmem>>, vector<1x1x8x128xf32>
    %89 = vector.shape_cast %88 : vector<1x1x8x128xf32> to vector<8x128xf32>
    %cst_23 = arith.constant 2.000000e-01 : f32
    %90 = vector.broadcast %cst_23 : f32 to vector<8x128xf32>
    %91 = arith.mulf %89, %90 : vector<8x128xf32>
    %cst_24 = arith.constant 4.13516665 : f32
    %92 = vector.broadcast %cst_24 : f32 to vector<8x128xf32>
    %93 = arith.minimumf %91, %92 : vector<8x128xf32>
    %c0_25 = arith.constant 0 : index
    %c3_26 = arith.constant 3 : index
    %c0_27 = arith.constant 0 : index
    %c0_28 = arith.constant 0 : index
    %94 = vector.load %arg3[%c0_25, %c3_26, %c0_27, %c0_28] : memref<1x4x8x128xf32, #tpu.memory_space<vmem>>, vector<1x1x8x128xf32>
    %95 = vector.shape_cast %94 : vector<1x1x8x128xf32> to vector<8x128xf32>
    %cst_29 = arith.constant 2.000000e-01 : f32
    %96 = vector.broadcast %cst_29 : f32 to vector<8x128xf32>
    %97 = arith.mulf %95, %96 : vector<8x128xf32>
    %cst_30 = arith.constant 4.13516665 : f32
    %98 = vector.broadcast %cst_30 : f32 to vector<8x128xf32>
    %99 = arith.minimumf %97, %98 : vector<8x128xf32>
    %100 = arith.mulf %83, %70 : vector<8x128xf32>
    %101 = arith.addf %100, %76 : vector<8x128xf32>
    %102 = arith.mulf %87, %73 : vector<8x128xf32>
    %103 = arith.addf %102, %79 : vector<8x128xf32>
    %104 = math.exp %93 : vector<8x128xf32>
    %105 = arith.mulf %104, %70 : vector<8x128xf32>
    %cst_31 = arith.constant 1.000000e+00 : f32
    %106 = vector.broadcast %cst_31 : f32 to vector<8x128xf32>
    %107 = arith.subf %105, %106 : vector<8x128xf32>
    %cst_32 = arith.constant 5.000000e-01 : f32
    %108 = vector.broadcast %cst_32 : f32 to vector<8x128xf32>
    %109 = arith.mulf %108, %107 : vector<8x128xf32>
    %110 = math.exp %99 : vector<8x128xf32>
    %111 = arith.mulf %110, %73 : vector<8x128xf32>
    %cst_33 = arith.constant 1.000000e+00 : f32
    %112 = vector.broadcast %cst_33 : f32 to vector<8x128xf32>
    %113 = arith.subf %111, %112 : vector<8x128xf32>
    %cst_34 = arith.constant 5.000000e-01 : f32
    %114 = vector.broadcast %cst_34 : f32 to vector<8x128xf32>
    %115 = arith.mulf %114, %113 : vector<8x128xf32>
    %116 = arith.subf %101, %109 : vector<8x128xf32>
    %c0_35 = arith.constant 0 : index
    %c0_36 = arith.constant 0 : index
    %c0_37 = arith.constant 0 : index
    %c0_38 = arith.constant 0 : index
    %117 = vector.load %arg4[%c0_35, %c0_36, %c0_37, %c0_38] : memref<1x4x8x128xf32, #tpu.memory_space<vmem>>, vector<1x1x8x128xf32>
    %118 = vector.shape_cast %117 : vector<1x1x8x128xf32> to vector<8x128xf32>
    %119 = vector.shape_cast %116 : vector<8x128xf32> to vector<1x1x8x128xf32>
    tpu.vector_store %arg4[%c0_35, %c0_36, %c0_37, %c0_38], %119 {strides = array<i32>} : memref<1x4x8x128xf32, #tpu.memory_space<vmem>>, vector<1x1x8x128xf32>,
    %120 = arith.subf %103, %115 : vector<8x128xf32>
    %c0_39 = arith.constant 0 : index
    %c1_40 = arith.constant 1 : index
    %c0_41 = arith.constant 0 : index
    %c0_42 = arith.constant 0 : index
    %121 = vector.load %arg4[%c0_39, %c1_40, %c0_41, %c0_42] : memref<1x4x8x128xf32, #tpu.memory_space<vmem>>, vector<1x1x8x128xf32>
    %122 = vector.shape_cast %121 : vector<1x1x8x128xf32> to vector<8x128xf32>
    %123 = vector.shape_cast %120 : vector<8x128xf32> to vector<1x1x8x128xf32>
    tpu.vector_store %arg4[%c0_39, %c1_40, %c0_41, %c0_42], %123 {strides = array<i32>} : memref<1x4x8x128xf32, #tpu.memory_space<vmem>>, vector<1x1x8x128xf32>,
    %124 = arith.addf %101, %109 : vector<8x128xf32>
    %c0_43 = arith.constant 0 : index
    %c2_44 = arith.constant 2 : index
    %c0_45 = arith.constant 0 : index
    %c0_46 = arith.constant 0 : index
    %125 = vector.load %arg4[%c0_43, %c2_44, %c0_45, %c0_46] : memref<1x4x8x128xf32, #tpu.memory_space<vmem>>, vector<1x1x8x128xf32>
    %126 = vector.shape_cast %125 : vector<1x1x8x128xf32> to vector<8x128xf32>
    %127 = vector.shape_cast %124 : vector<8x128xf32> to vector<1x1x8x128xf32>
    tpu.vector_store %arg4[%c0_43, %c2_44, %c0_45, %c0_46], %127 {strides = array<i32>} : memref<1x4x8x128xf32, #tpu.memory_space<vmem>>, vector<1x1x8x128xf32>,
    %128 = arith.addf %103, %115 : vector<8x128xf32>
    %c0_47 = arith.constant 0 : index
    %c3_48 = arith.constant 3 : index
    %c0_49 = arith.constant 0 : index
    %c0_50 = arith.constant 0 : index
    %129 = vector.load %arg4[%c0_47, %c3_48, %c0_49, %c0_50] : memref<1x4x8x128xf32, #tpu.memory_space<vmem>>, vector<1x1x8x128xf32>
    %130 = vector.shape_cast %129 : vector<1x1x8x128xf32> to vector<8x128xf32>
    %131 = vector.shape_cast %128 : vector<8x128xf32> to vector<1x1x8x128xf32>
    tpu.vector_store %arg4[%c0_47, %c3_48, %c0_49, %c0_50], %131 {strides = array<i32>} : memref<1x4x8x128xf32, #tpu.memory_space<vmem>>, vector<1x1x8x128xf32>,
    return
  }
  func.func @transform_0(%arg0: i32, %arg1: i32, %arg2: memref<2x8xi32, #tpu.memory_space<smem>>) -> (i32, i32, i32, i32) {
    %c0_i32 = arith.constant 0 : i32
    %c0_i32_0 = arith.constant 0 : i32
    %c0_i32_1 = arith.constant 0 : i32
    return %arg1, %c0_i32, %arg0, %c0_i32_0 : i32, i32, i32, i32
  }
  func.func @transform_1(%arg0: i32, %arg1: i32, %arg2: memref<2x8xi32, #tpu.memory_space<smem>>) -> (i32, i32, i32, i32) {
    %c0_i32 = arith.constant 0 : i32
    %c0_i32_0 = arith.constant 0 : i32
    %c0_i32_1 = arith.constant 0 : i32
    return %arg1, %c0_i32, %arg0, %c0_i32_0 : i32, i32, i32, i32
  }
  func.func @transform_2(%arg0: i32, %arg1: i32, %arg2: memref<2x8xi32, #tpu.memory_space<smem>>) -> (i32, i32, i32) {
    %c0_i32 = arith.constant 0 : i32
    %c0_i32_0 = arith.constant 0 : i32
    %c0_i32_1 = arith.constant 0 : i32
    return %c0_i32, %arg0, %c0_i32_0 : i32, i32, i32
  }
  func.func @transform_3(%arg0: i32, %arg1: i32, %arg2: memref<2x8xi32, #tpu.memory_space<smem>>) -> (i32, i32) {
    %c0_i32 = arith.constant 0 : i32
    %c0_i32_0 = arith.constant 0 : i32
    return %arg0, %c0_i32 : i32, i32
  }
}

</mosaic_0001>

<bundles_post_ra>
// kernel: tpu_custom_call.1
= control target key start
LH: loop header
LB: loop body
LE: loop exit
PB: predicated region body
PF: predicated region fallthrough
CT: control target
= control target key end

     0   :  { %s1377_s0 = inlined_call_operand.hbm [shape: s32[2,8], index: 0, kind: input, shape index: {}]   ;;  %s1378_s1 = inlined_call_operand.hbm [shape: f32[2,4,16,128], index: 1, kind: input, shape index: {}]   ;;  %s1379_s2 = inlined_call_operand.hbm [shape: f32[2,4,16,128], index: 2, kind: output, shape index: {0}]   ;;  %s1380_s3 = inlined_call_operand.hbm [shape: f32[4,16,128], index: 3, kind: output, shape index: {1}]   ;;  %s1381_s4 = inlined_call_operand.hbm [shape: s32[16,128], index: 4, kind: output, shape index: {2}]  }
   0x1   :  { %1391 = sst [smem:[#allocation22_spill]] %s1378_s1  ;;  %s719_s17 = scalar_lea.hbm %s1377_s0, 32 }
   0x2   :  { %p720_p0 = scmp.ne.s32.totalorder %s1377_s0, %s719_s17  ;;  %p723_p1 = scmp.lt.u32.totalorder %s719_s17, %s1377_s0 }
   0x4   :  { %p725_p2 = pnand %p723_p1, %p720_p0 }
   0x6   :  { %728 = shalt.err (!%p725_p2)  }
   0x7   :  { %s945_s22 = smov [#allocation3]  }
   0x8   :  { %11 = dma.hbm_to_smem %s1377_s0, 32, %s945_s22, [#allocation2] }
   0x9   :  { %887 = dma.done.wait [#allocation2], 32 }
   0xa   :  { %888 = vsyncadd [#allocation2], 4294967264 }
   0xb   :  { %13 = sfence }
   0xc   :  { %14 = vsyncpa [#allocation5], 0 }
   0xd   :  { %16 = vsyncpa [#allocation5 + $0x1], 0 }
   0xe   :  { %17 = vsyncpa [#allocation6], 0 }
   0xf   :  { %19 = vsyncpa [#allocation6 + $0x1], 0 }
  0x10   :  { %20 = vsyncpa [#allocation9], 0 }
  0x11   :  { %22 = vsyncpa [#allocation9 + $0x1], 0  ;;  %s995_s25 = smov 0   ;;  %s997_s26 = smov 0  }
  0x12   :  { %s999_s27 = smov 0   ;;  %s1001_s28 = smov 0  }
  0x13   :  { %s1003_s29 = smov 0   ;;  %s1005_s0 = smov 0  }
  0x14   :  { %s1007_s30 = smov 0   ;;  %s1009_s5 = smov 0  }
  0x15   :  { %s1011_s6 = smov 0   ;;  %s1013_s7 = smov 0  }
  0x16   :  { %s1015_s8 = smov 0  }
  0x17 LB: > { %1392 = sst [smem:[#allocation15_spill]] %s911_s27  ;;  %s1051_s9 = sadd.s32 4294967295, %s943_s8   ;;  %s943_s8 = sphi %s1015_s8, %s28_s8   ;;  %s939_s7 = sphi %s1013_s7, %s1419_s7   ;;  %s935_s6 = sphi %s1011_s6, %s1418_s6   ;;  %s931_s5 = sphi %s1009_s5, %s1417_s5   ;;  %s927_s30 = sphi %s1007_s30, %s1416_s30   ;;  %s923_s0 = sphi %s1005_s0, %s1424_s0   ;;  %s919_s29 = sphi %s1003_s29, %s1423_s29   ;;  %s915_s28 = sphi %s1001_s28, %s1422_s28   ;;  %s911_s27 = sphi %s999_s27, %s1414_s27   ;;  %s907_s26 = sphi %s997_s26, %s1421_s26   ;;  %s903_s25 = sphi %s995_s25, %s1420_s25  }
  0x18   : > { %1393 = sst [smem:[#allocation16_spill]] %s935_s6  ;;  %s1382_s10 = sadd.s32 4294967294, %s943_s8  }
  0x19   : > { %1394 = sst [smem:[#allocation17_spill]] %s939_s7  ;;  %s37_s11 = sadd.s32 1, %s935_s6 }
  0x1a   : > { %s40_s12 = sadd.s32 1, %s939_s7  ;;  %p38_p3 = scmp.ge.s32.totalorder %s37_s11, 2 }
  0x1b   : > { %s49_s13 = sadd.s32 1, %s923_s0  ;;  %p56_p4 = scmp.ne.s32.totalorder %s923_s0, %s919_s29 }
  0x1c   : > { %p57_p5 = scmp.eq.s32.totalorder %s943_s8, 0  ;;  %s1426_s11 = smov (%p38_p3, %s37_s11), 0 }
  0x1d   : > { %1395 = sst [smem:[#allocation18_spill]] %s1426_s11  ;;  %s1428_s12 = smov (!%p38_p3, %s40_s12), %s939_s7 }
  0x1e   : > { %s44_s14 = ssub.s32 %s935_s6, %s1426_s11  ;;  %p1065_p6 = por %p57_p5, %p56_p4 }
  0x1f   : > { %p42_p7 = scmp.ge.s32.totalorder %s1428_s12, 2  ;;  %p62_p8 = scmp.ne.s32.totalorder %s919_s29, %s915_s28 }
  0x20   : > { %p63_p9 = scmp.eq.s32.totalorder %s1051_s9, 0  ;;  %p88_p10 = scmp.eq.s32.totalorder %s1051_s9, 3 }
  0x21   : > { %s1430_s12 = smov (%p42_p7, %s1428_s12), 0  ;;  %p94_p13 = scmp.eq.s32.totalorder %s1382_s10, 3 }
  0x22   : > { %1397 = sst [smem:[#allocation19_spill]] %s1430_s12  ;;  %p1075_p11 = por %p63_p9, %p62_p8 }
  0x23   : > { %p1081_p12 = por %p88_p10, %p56_p4  ;;  %s45_s18 = ssub.s32 %s939_s7, %s1430_s12 }
  0x24   : > { %s46_s19 = sor.u32 %s45_s18, %s44_s14  ;;  %p101_p0 = scmp.eq.s32.totalorder %s45_s18, 0 }
  0x25   : > { %s1399_s17 = scalar_select %p1081_p12, 1, 0 }
  0x26   : > { %p47_p1 = scmp.eq.s32.totalorder %s46_s19, 0  ;;  %p1089_p2 = por %p94_p13, %p62_p8 }
  0x27   : > { %s103_s21 = sadd.s32 1, %s911_s27  ;;  %p113_p3 = scmp.ne.s32.totalorder %s911_s27, %s907_s26 }
  0x28   : > { %s1400_s20 = scalar_select %p1089_p2, 1, 0 }
  0x29   : > { %s1097_s22 = scalar_select %p47_p1, %s923_s0, %s49_s13  }
  0x2a   : > { %s1100_s23 = scalar_select %p101_p0, %s911_s27, %s103_s21  }
  0x2b   : > { %1401 = sst [smem:[#allocation20_spill]] %s1097_s22  ;;  %p1104_p4 = por %p113_p3, %p88_p10 }
  0x2c   : > { %1402 = sst [smem:[#allocation21_spill]] %s1100_s23  ;;  %p119_p5 = scmp.ne.s32.totalorder %s907_s26, %s903_s25 }
  0x2d   : > { %s1403_s24 = scalar_select %p1104_p4, 1, 0 }
  0x2e   : > { %p614_p7 = scmp.lt.s32.totalorder %s943_s8, 4  ;;  %p1111_p9 = por %p119_p5, %p94_p13 }
  0x2f   : > { %s166_s18 = sand.u32 1, %s923_s0   ;;  %s560_s10 = sshll.u32 %s935_s6, 3 }
  0x30   : > { %s1404_s14 = scalar_select %p1111_p9, 1, 0 }
  0x31   : > { %s559_s19 = sshll.u32 %s166_s18, 5  ;;  %s175_s12 = sadd.s32 %s939_s7, %s560_s10 }
  0x32   : > { %s170_s11 = scalar_lea.vmem [#allocation4], %s559_s19  ;;  %s561_s22 = sshll.u32 %s175_s12, 7 }
  0x33   : > { %s178_s13 = sshll.u32 %s170_s11, 4  ;;  %s1405_s1 = sld [smem:[#allocation22_spill]]  ;;  %s1118_s13 = int_to_ptr.vmem [resolvable:$true] %s178_s13 }
  0x34   : > { %p1127_p8 = pnand %p614_p7, %p1065_p6  ;;  %s1131_s10 = scalar_lea.sflag [#allocation5], %s166_s18 }
  0x36   : > { %p731_p13 = pneg %p1127_p8 }
  0x39   : > { %s1123_s27 = scalar_lea.hbm %s1405_s1, %s561_s22  ;;  %s734_s22 = scalar_lea.hbm %s1405_s1, 2048 }
  0x3a   : > { %s729_s11 = scalar_lea.hbm %s1123_s27, 512  ;;  %p735_p6 = scmp.lt.u32.totalorder %s1123_s27, %s1405_s1 }
  0x3b   : > { %p730_p10 = scmp.ne.s32.totalorder %s1123_s27, %s729_s11  ;;  %p736_p3 = scmp.lt.u32.totalorder %s734_s22, %s729_s11 }
  0x3c   : > { %p738_p7 = scmp.lt.u32.totalorder %s729_s11, %s1123_s27 }
  0x3d   : > { %p732_p0 = pnand %p731_p13, %p730_p10  ;;  %p737_p5 = por %p736_p3, %p735_p6 }
  0x3f   : > { %p733_p1 = pneg %p732_p0  ;;  %p739_p9 = por %p738_p7, %p737_p5 }
  0x41   : > { %p740_p2 = pnand %p739_p9, %p733_p1 }
  0x43   : > { %743 = shalt.err (!%p740_p2)
}
  0x44   : > { %s744_s18 = scalar_lea.vmem %s1118_s13, 512  ;;  %s946_s21 = smov [#allocation4]  }
  0x45   : > { %p745_p10 = scmp.ne.s32.totalorder %s1118_s13, %s744_s18  ;;  %s749_s12 = sshll.u32 %s946_s21, 4  ;;  %s750_s12 = int_to_ptr.vmem [resolvable:$false] %s749_s12 }
  0x46   : > { %s751_s15 = scalar_lea.vmem %s750_s12, 1024  ;;  %p752_p4 = scmp.lt.s32.totalorder %s1118_s13, %s750_s12 }
  0x47   : > { %p747_p0 = pnand %p745_p10, %p731_p13  ;;  %p753_p6 = scmp.lt.s32.totalorder %s751_s15, %s744_s18 }
  0x49   : > { %p748_p12 = pneg %p747_p0  ;;  %p754_p3 = por %p753_p6, %p752_p4 }
  0x4b   : > { %p755_p5 = pnand %p754_p3, %p748_p12 }
  0x4d   : > { %758 = shalt.err (!%p755_p5)
}
  0x4e   : > { %s947_s11 = smov 256   ;;  %s948_s22 = smov 128  }
  0x4f   : > { %s949_s23 = smov 8   ;;  %p562_p2 = scmp.ge.s32.totalorder %s943_s8, 1 }
  0x50   : > { %603 = dma.hbm_to_vmem [thread:$0]  (!%p1127_p8), %s1123_s27, 512, %s1118_s13, %s1131_s10, %s947_s11, %s948_s22, %s949_s23  }
  0x51   : > { %p186_p9 = scmp.lt.s32.totalorder %s943_s8, 5 }
  0x53   : > { %p187_p13 = pnand %p562_p2, %p186_p9 }
  0x54   : > { %s1162_s19 = sand.u32 (!%p187_p13), 1, %s919_s29  }
  0x55   : > { %190 = sbr.rel (%p187_p13) target bundleno = 226 (0xe2), region = 24  ;;  %s1388_s18 = sshll.u32 (!%p187_p13), %s1162_s19, 5 }
  0x56   : > { %s193_s21 = scalar_lea.sflag (!%p187_p13), [#allocation5], %s1162_s19  ;;  %s1168_s12 = scalar_lea.vmem (!%p187_p13), [#allocation4], %s1388_s18 }
  0x5c   : > { %890 = dma.done.wait (%p1075_p11), %s193_s21, 512  }
  0x5d   : > { %892 = vsyncadd (%p1075_p11), %s193_s21, 4294966784  ;;  %s219_s27 = sand.u32 1, %s907_s26   ;;  %v244_v0 = vlaneseq  ;;  %s1180_s10 = sshll.u32 %s931_s5, 7  ;;  %v950_v16 = vmov 0  }
  0x5e   : > { %s1175_s13 = sshll.u32 %s219_s27, 5  ;;  %s1177_s25 = sshll.u32 %s219_s27, 3 }
  0x5f   : > { %s231_s15 = sadd.s32 1, %s1180_s10  ;;  %v245_v1 = vshrl.u32 %v244_v0, 7  ;;  %s230_s22 = sld [smem:[#allocation3 + %s1180_s10]]  ;;  %v247_v2 = vand.u32 127, %v244_v0 }
  0x60   : > { %s232_s11 = sld [smem:[#allocation3 + %s231_s15]]  ;;  %s233_s16 = sadd.s32 2, %s1180_s10 }
  0x61   : > { %v248_v3 = vmul.u32 128, %v245_v1  ;;  %s234_s23 = sld [smem:[#allocation3 + %s233_s16]]  ;;  %s238_s21 = sadd.s32 4, %s1180_s10 }
  0x62   : > { %s242_s27 = sadd.s32 6, %s1180_s10  ;;  %s239_s15 = sld [smem:[#allocation3 + %s238_s21]] }
  0x63   : > { %v249_v6 = vadd.s32 %v248_v3, %v247_v2  ;;  %s243_s18 = sld [smem:[#allocation3 + %s242_s27]]  ;;  %s240_s1 = sadd.s32 5, %s1180_s10 }
  0x64   : > { %s241_s6 = sld [smem:[#allocation3 + %s240_s1]]  ;;  %s1407_s1 = sshll.u32 %s1162_s19, 5 }
  0x65   : > { %v250_v7 = vstv %s230_s22  ;;  %p569_p11 = scmp.ne.s32.totalorder %s927_s30, 0 }
  0x66   : > { %v252_v4 = vstv %s232_s11  ;;  %v251_v8 = vadd.s32 %v250_v7, %v249_v6  ;;  %s236_s11 = sadd.s32 3, %s1180_s10  ;;  %v951_v42 = vmov (!%p569_p11), 0  }
  0x67   : > { %v253_v5 = vcvt.s32.f32 %v252_v4  ;;  %s568_s7 = sshll.u32 %s234_s23, 1  ;;  %s237_s22 = sld [smem:[#allocation3 + %s236_s11]] }
  0x68   : > { %v254_v9 = vcvt.s32.f32 %v251_v8  ;;  %v268_v20 = vstv %s568_s7  ;;  %v275_v22 = vstv %s239_s15  ;;  %s1199_s7 = scalar_lea.vmem [#allocation7], %s1407_s1 }
  0x69   : > { %713 = vrcp.f32 %v253_v5  ;;  %v283_v23 = vstv %s243_s18  ;;  %s1202_s18 = scalar_lea.vmem [#allocation8], %s1175_s13 }
  0x6a   : > { %v279_v30 = vstv %s241_s6  ;;  %s228_s6 = scalar_lea.vmem [#allocation10], %s1177_s25 }
  0x6d   : > { %v271_v29 = vstv %s237_s22 }
  0x73   : > { %v714_v10 = vpop.eup %713 }
  0x74   : > { %v256_v11 = vmul.f32 %v714_v10, %v254_v9 }
  0x76   : > { %v590_v12 = vtrunc.f32 %v256_v11 }
  0x78   : > { %v591_v13 = vcvt.f32.s32 %v590_v12 }
  0x7a   : > { %v258_v14 = vmul.u32 %v591_v13, %v252_v4 }
  0x7c   : > { %v259_v15 = vsub.s32 %v251_v8, %v258_v14 }
  0x7e   : > { %vm260_vm0 = vcmp.ge.s32.totalorder %v259_v15, %v252_v4  ;;  %vm263_vm1 = vcmp.lt.s32.totalorder %v259_v15, 0 }
  0x7f   : > { %v261_v17 = vsel %vm260_vm0, 1, %v950_v16  ;;  %v264_v18 = vsel %vm263_vm1, 1, %v950_v16 }
  0x80   : > { %v262_v19 = vadd.s32 %v591_v13, %v261_v17 }
  0x82   : > { %v265_v21 = vsub.s32 %v262_v19, %v264_v18 }
  0x84   : > { %v266_v24 = vmul.u32 %v265_v21, %v252_v4  ;;  %v270_v25 = vmul.u32 %v268_v20, %v265_v21 }
  0x86   : > { %v267_v26 = vsub.s32 %v251_v8, %v266_v24  ;;  %v276_v27 = vadd.s32 %v275_v22, %v270_v25  ;;  %v284_v28 = vadd.s32 %v283_v23, %v270_v25 }
  0x88   : > { %v269_v31 = vmul.u32 %v268_v20, %v267_v26  ;;  %v277_v32 = vcvt.s32.f32 %v276_v27  ;;  %v285_v33 = vcvt.s32.f32 %v284_v28  ;;  %290 = sbr.rel (%p569_p11) target bundleno = 150 (0x96), region = 32 }
  0x8a   : > { %v272_v34 = vadd.s32 %v271_v29, %v269_v31  ;;  %v1189_v35 = vmul.f32 0.5, %v277_v32  ;;  %v280_v36 = vadd.s32 %v279_v30, %v269_v31  ;;  %v1191_v37 = vmul.f32 0.5, %v285_v33 }
  0x8c   : > { %v273_v38 = vcvt.s32.f32 %v272_v34  ;;  %v281_v39 = vcvt.s32.f32 %v280_v36  ;;  %570 = vst [vmem:[%s1202_s18 + $0x8] sm:$0xff] (!%p569_p11), %v1189_v35  ;;  %572 = vst [vmem:[%s1202_s18 + $0x18] sm:$0xff] (!%p569_p11), %v1191_v37  ;;  %vm299_vm3 = vcmp.ge.f32.partialorder (!%p569_p11), %v1189_v35, -0.0  ;;  %vm303_vm5 = vcmp.lt.f32.partialorder (!%p569_p11), %v1191_v37, 32.0 }
  0x8e   : > { %v1193_v40 = vmul.f32 0.5, %v273_v38  ;;  %v1195_v41 = vmul.f32 0.5, %v281_v39 }
  0x90   : > { %291 = vst [vmem:[%s1202_s18] sm:$0xff] %v1193_v40  ;;  %571 = vst [vmem:[%s1202_s18 + $0x10] sm:$0xff] %v1195_v41  ;;  %vm298_vm2 = vcmp.ge.f32.partialorder %v1193_v40, -0.0  ;;  %vm301_vm4 = vcmp.lt.f32.partialorder %v1195_v41, 32.0 }
  0x91   : > { %vm300_vm6 = vmand %vm298_vm2, %vm299_vm3 }
  0x92   : > { %vm302_vm7 = vmand %vm300_vm6, %vm301_vm4 }
  0x93   : > { %vm304_vm8 = vmand %vm302_vm7, %vm303_vm5 }
  0x94   : > { %v305_v43 = vsel %vm304_vm8, 1, %v951_v42 }
  0x95   : > { %306 = vst [vmem:[%s228_s6] sm:$0xff] %v305_v43 }
  0x96 PF: > { %v574_v44 = vld [vmem:[%s1168_s12 + $0x10] sm:$0xff]  ;;  %s358_s13 = sand.u32 1, %s1051_s9   ;;  %v575_v46 = vld [vmem:[%s1168_s12 + $0x18] sm:$0xff]  ;;  %s1227_s21 = scalar_lea.hbm %s1380_s3, %s1180_s10 }
  0x97   : > { %v322_v45 = vmul.f32 0.2, %v574_v44  ;;  %v326_v48 = vmul.f32 0.2, %v575_v46  ;;  %s393_s27 = sshll.u32 %s1202_s18, 4  ;;  %s1232_s15 = scalar_lea.sflag [#allocation9], %s358_s13  ;;  %s1230_s27 = int_to_ptr.vmem [resolvable:$true] %s393_s27 }
  0x98   : > { %s759_s9 = scalar_lea.vmem %s1230_s27, 512  ;;  %p1408_p4 = scmp.ne.s32.totalorder %s1403_s24, 0 }
  0x99   : > { %v323_v47 = vmin.f32 %v322_v45, 4.1351666  ;;  %v327_v50 = vmin.f32 %v326_v48, 4.1351666  ;;  %p760_p12 = scmp.ne.s32.totalorder %s1230_s27, %s759_s9  ;;  %s952_s11 = smov [#allocation8]  }
  0x9a   : > { %s763_s22 = sshll.u32 %s952_s11, 4  ;;  %s764_s22 = int_to_ptr.vmem [resolvable:$false] %s763_s22 }
  0x9b   : > { %v332_v49 = vmul.f32 1.442695, %v323_v47  ;;  %p761_p8 = pnand %p760_p12, %p1408_p4  ;;  %s765_s1 = scalar_lea.vmem %s764_s22, 1024 }
  0x9c   : > { %p766_p7 = scmp.lt.s32.totalorder %s1230_s27, %s764_s22  ;;  %p767_p10 = scmp.lt.s32.totalorder %s765_s1, %s759_s9 }
  0x9d   : > { %p762_p1 = pneg %p761_p8 }
  0x9e   : > { %p768_p0 = por %p767_p10, %p766_p7 }
  0xa0   : > { %p769_p6 = pnand %p768_p0, %p762_p1 }
  0xa2   : > { %772 = shalt.err (!%p769_p6)
}
  0xa3   : > { %s773_s18 = scalar_lea.hbm %s1227_s21, 512  ;;  %s777_s23 = scalar_lea.hbm %s1380_s3, 1024 }
  0xa4   : > { %p774_p3 = scmp.ne.s32.totalorder %s1227_s21, %s773_s18  ;;  %p778_p9 = scmp.lt.u32.totalorder %s1227_s21, %s1380_s3 }
  0xa5   : > { %p779_p13 = scmp.lt.u32.totalorder %s777_s23, %s773_s18  ;;  %p781_p12 = scmp.lt.u32.totalorder %s773_s18, %s1227_s21 }
  0xa6   : > { %p775_p5 = pnand %p774_p3, %p1408_p4 }
  0xa7   : > { %p780_p11 = por %p779_p13, %p778_p9 }
  0xa8   : > { %p776_p2 = pneg %p775_p5 }
  0xa9   : > { %p782_p8 = por %p781_p12, %p780_p11 }
  0xab   : > { %p783_p1 = pnand %p782_p8, %p776_p2 }
  0xad   : > { %786 = shalt.err (!%p783_p1)
}
  0xae   : > { %s953_s9 = smov 128   ;;  %s954_s1 = smov 256   ;;  %715 = vpow2.f32 %v332_v49  ;;  %v337_v51 = vmul.f32 1.442695, %v327_v50  ;;  %v315_v52 = vld [vmem:[%s1168_s12] sm:$0xff]  ;;  %v307_v53 = vsub.f32 %v1195_v41, %v1193_v40  ;;  %v573_v54 = vld [vmem:[%s1168_s12 + $0x8] sm:$0xff] }
  0xaf   : > { %s955_s13 = smov 8   ;;  %s1263_s23 = scalar_lea.hbm %s1381_s4, %s1180_s10 }
  0xb0   : > { %595 = dma.vmem_to_hbm [thread:$0]  (%p1408_p4), %s1230_s27, 512, %s1227_s21, %s1232_s15, %s953_s9, %s954_s1, %s955_s13   ;;  %717 = vpow2.f32 %v337_v51 }
  0xb1   : > { %s409_s11 = sshll.u32 %s228_s6, 4  ;;  %s956_s21 = smov [#allocation10]   ;;  %s410_s11 = int_to_ptr.vmem [resolvable:$true] %s409_s11 }
  0xb2   : > { %s787_s22 = scalar_lea.vmem %s410_s11, 128  ;;  %s791_s27 = sshll.u32 %s956_s21, 4  ;;  %s792_s27 = int_to_ptr.vmem [resolvable:$false] %s791_s27 }
  0xb3   : > { %p788_p7 = scmp.ne.s32.totalorder %s410_s11, %s787_s22  ;;  %s793_s18 = scalar_lea.vmem %s792_s27, 256 }
  0xb4   : > { %p794_p6 = scmp.lt.s32.totalorder %s410_s11, %s792_s27  ;;  %p795_p3 = scmp.lt.s32.totalorder %s793_s18, %s787_s22 }
  0xb5   : > { %p789_p10 = pnand %p788_p7, %p1408_p4 }
  0xb6   : > { %p796_p5 = por %p795_p3, %p794_p6 }
  0xb7   : > { %p790_p0 = pneg %p789_p10 }
  0xb9   : > { %p797_p2 = pnand %p796_p5, %p790_p0 }
  0xbb   : > { %800 = shalt.err (!%p797_p2)
}
  0xbc   : > { %s801_s12 = scalar_lea.hbm %s1263_s23, 128  ;;  %s805_s6 = scalar_lea.hbm %s1381_s4, 256 }
  0xbd   : > { %p802_p9 = scmp.ne.s32.totalorder %s1263_s23, %s801_s12  ;;  %p806_p12 = scmp.lt.u32.totalorder %s1263_s23, %s1381_s4 }
  0xbe   : > { %p807_p8 = scmp.lt.u32.totalorder %s805_s6, %s801_s12  ;;  %p809_p7 = scmp.lt.u32.totalorder %s801_s12, %s1263_s23 }
  0xbf   : > { %p803_p13 = pnand %p802_p9, %p1408_p4 }
  0xc0   : > { %p808_p1 = por %p807_p8, %p806_p12 }
  0xc1   : > { %p804_p11 = pneg %p803_p13 }
  0xc2   : > { %p810_p10 = por %p809_p7, %p808_p1 }
  0xc4   : > { %p811_p0 = pnand %p810_p10, %p804_p11 }
  0xc6   : > { %814 = shalt.err (!%p811_p0)
}
  0xc7   : > { %596 = dma.vmem_to_hbm [thread:$0]  (%p1408_p4), %s410_s11, 128, %s1263_s23, %s1232_s15   ;;  %v311_v55 = vadd.f32 %v1195_v41, %v1193_v40  ;;  %v316_v56 = vmul.f32 0.1, %v315_v52  ;;  %v309_v57 = vsub.f32 %v1191_v37, %v1189_v35  ;;  %v308_v58 = vadd.f32 1.0, %v307_v53  ;;  %v716_v0 = vpop.eup %715 }
  0xc8   : > { %v313_v59 = vadd.f32 %v1191_v37, %v1189_v35  ;;  %v319_v60 = vmul.f32 0.1, %v573_v54  ;;  %s584_s24 = sshll.u32 %s927_s30, 3  ;;  %v718_v4 = vpop.eup %717  ;;  %s378_s11 = sshll.u32 %s1199_s7, 4  ;;  %s1305_s11 = int_to_ptr.vmem [resolvable:$true] %s378_s11 }
  0xc9   : > { %v312_v61 = vmul.f32 0.5, %v311_v55  ;;  %v328_v62 = vmul.f32 %v316_v56, %v308_v58  ;;  %v310_v63 = vadd.f32 1.0, %v309_v57  ;;  %v334_v1 = vmul.f32 %v716_v0, %v308_v58  ;;  %s375_s15 = sadd.s32 %s931_s5, %s584_s24  ;;  %s354_s5 = scalar_lea.sflag [#allocation6], %s1162_s19 }
  0xca   : > { %v314_v2 = vmul.f32 0.5, %v313_v59  ;;  %s585_s23 = sshll.u32 %s375_s15, 7  ;;  %s815_s18 = scalar_lea.vmem %s1305_s11, 512 }
  0xcb   : > { %v330_v3 = vmul.f32 %v319_v60, %v310_v63  ;;  %v329_v5 = vadd.f32 %v328_v62, %v312_v61  ;;  %v576_v6 = vadd.f32 -1.0, %v334_v1  ;;  %v339_v7 = vmul.f32 %v718_v4, %v310_v63  ;;  %s1303_s27 = scalar_lea.hbm %s1379_s2, %s585_s23  ;;  %p816_p4 = scmp.ne.s32.totalorder %s1305_s11, %s815_s18 }
  0xcc   : > { %p1409_p6 = scmp.ne.s32.totalorder %s1399_s17, 0  ;;  %s957_s12 = smov [#allocation7]  }
  0xcd   : > { %v336_v8 = vmul.f32 0.5, %v576_v6  ;;  %v331_v9 = vadd.f32 %v330_v3, %v314_v2  ;;  %v577_v10 = vadd.f32 -1.0, %v339_v7  ;;  %s819_s25 = sshll.u32 %s957_s12, 4  ;;  %s820_s25 = int_to_ptr.vmem [resolvable:$false] %s819_s25 }
  0xce   : > { %p817_p3 = pnand %p816_p4, %p1409_p6  ;;  %s821_s10 = scalar_lea.vmem %s820_s25, 1024 }
  0xcf   : > { %v342_v11 = vsub.f32 %v329_v5, %v336_v8  ;;  %v341_v12 = vmul.f32 0.5, %v577_v10  ;;  %v347_v13 = vadd.f32 %v336_v8, %v329_v5  ;;  %p822_p2 = scmp.lt.s32.totalorder %s1305_s11, %s820_s25  ;;  %p823_p9 = scmp.lt.s32.totalorder %s821_s10, %s815_s18 }
  0xd0   : > { %p818_p5 = pneg %p817_p3 }
  0xd1   : > { %343 = vst [vmem:[%s1199_s7] sm:$0xff] %v342_v11  ;;  %v344_v14 = vsub.f32 %v331_v9, %v341_v12  ;;  %579 = vst [vmem:[%s1199_s7 + $0x10] sm:$0xff] %v347_v13  ;;  %v350_v15 = vadd.f32 %v341_v12, %v331_v9  ;;  %p824_p13 = por %p823_p9, %p822_p2 }
  0xd3   : > { %578 = vst [vmem:[%s1199_s7 + $0x8] sm:$0xff] %v344_v14  ;;  %580 = vst [vmem:[%s1199_s7 + $0x18] sm:$0xff] %v350_v15  ;;  %p825_p11 = pnand %p824_p13, %p818_p5 }
  0xd5   : > { %828 = shalt.err (!%p825_p11)
}
  0xd6   : > { %s829_s7 = scalar_lea.hbm %s1303_s27, 512  ;;  %s833_s21 = scalar_lea.hbm %s1379_s2, 2048 }
  0xd7   : > { %p830_p12 = scmp.ne.s32.totalorder %s1303_s27, %s829_s7  ;;  %p834_p7 = scmp.lt.u32.totalorder %s1303_s27, %s1379_s2 }
  0xd8   : > { %p835_p10 = scmp.lt.u32.totalorder %s833_s21, %s829_s7  ;;  %p837_p4 = scmp.lt.u32.totalorder %s829_s7, %s1303_s27 }
  0xd9   : > { %p831_p8 = pnand %p830_p12, %p1409_p6 }
  0xda   : > { %p836_p0 = por %p835_p10, %p834_p7 }
  0xdb   : > { %p832_p1 = pneg %p831_p8 }
  0xdc   : > { %p838_p3 = por %p837_p4, %p836_p0 }
  0xde   : > { %p839_p5 = pnand %p838_p3, %p832_p1 }
  0xe0   : > { %842 = shalt.err (!%p839_p5)
}
  0xe1   : > { %594 = dma.vmem_to_hbm [thread:$0]  (%p1409_p6), %s1305_s11, 512, %s1303_s27, %s354_s5, %s953_s9, %s954_s1, %s955_s13  }
  0xe2 PF: > { %p615_p2 = scmp.ge.s32.totalorder %s943_s8, 2  ;;  %s421_s23 = sand.u32 1, %s915_s28  }
  0xe3   : > { %p1410_p9 = scmp.ne.s32.totalorder %s1400_s20, 0  ;;  %s422_s30 = scalar_lea.sflag [#allocation6], %s421_s23 }
  0xe5   : > { %p605_p13 = pnand %p615_p2, %p1410_p9 }
  0xe7   : > { %894 = dma.done.wait (!%p605_p13), %s422_s30, 512  }
  0xe8   : > { %896 = vsyncadd (!%p605_p13), %s422_s30, 4294966784  ;;  %s1411_s17 = sadd.s32 4294967294, %s943_s8   ;;  %p1412_p11 = scmp.ne.s32.totalorder %s1404_s14, 0 }
  0xe9   : > { %s430_s22 = sand.u32 1, %s1411_s17  }
  0xea   : > { %p608_p12 = pnand %p615_p2, %p1412_p11  ;;  %s431_s19 = scalar_lea.sflag [#allocation9], %s430_s22 }
  0xec   : > { %898 = dma.done.wait (!%p608_p12), %s431_s19, 640  }
  0xed   : > { %900 = vsyncadd (!%p608_p12), %s431_s19, 4294966656  ;;  %s28_s8 = sadd.s32 1, %s943_s8   ;;  %s1413_s9 = sld [smem:[#allocation15_spill]] }
  0xee   : > { %p25_p6 = scmp.ge.s32.totalorder %s28_s8, 6   ;;  %s1414_s27 = sld [smem:[#allocation21_spill]] }
  0xef   : > { %s1415_s20 = sld [smem:[#allocation20_spill]]  ;;  %s1416_s30 = sld [smem:[#allocation16_spill]] }
  0xf0   : > { %s1417_s5 = sld [smem:[#allocation17_spill]]  ;;  %s1418_s6 = sld [smem:[#allocation18_spill]] }
  0xf1   : > { %s1419_s7 = sld [smem:[#allocation19_spill]]  ;;  %s1420_s25 = smov %s907_s26 }
  0xf2   : > { %s1422_s28 = smov %s919_s29  ;;  %s1423_s29 = smov %s923_s0 }
  0xf3   : > { %s1421_s26 = smov %s1413_s9  ;;  %27 = sbr.rel (!%p25_p6) target bundleno = 23 (0x17), region = 114 }
  0xf5   : > { %s1424_s0 = smov %s1415_s20 }
  0xfa   :  { %445 = vsyncpa [#allocation5], 1 }
  0xfb   :  { %447 = vsyncpa [#allocation5 + $0x1], 1 }
  0xfc   :  { %448 = vsyncpa [#allocation6], 1 }
  0xfd   :  { %450 = vsyncpa [#allocation6 + $0x1], 1 }
  0xfe   :  { %451 = vsyncpa [#allocation9], 1 }
  0xff   :  { %453 = vsyncpa [#allocation9 + $0x1], 1 }

</bundles_post_ra>
